<compile_context>
chip_gen: v7x
topology: tpu7x:2x2x1
jax: 0.10.0
libtpu: 0.0.40
codegen_flags: <defaults>
</compile_context>

<pallas_src>
import functools

import jax
import jax.numpy as jnp
from jax.experimental import pallas as pl
from jax.experimental.pallas import tpu as pltpu


def _round_up(a, b):
    return ((a + b - 1) // b) * b


def _dice_kernel(x_ref, lab_ref, loss_ref, inter_acc, isum_acc, tsum_acc, *,
                 num_classes):
    n = pl.program_id(0)
    t = pl.program_id(1)
    is_first = jnp.logical_and(n == 0, t == 0)
    is_last = jnp.logical_and(n == pl.num_programs(0) - 1,
                              t == pl.num_programs(1) - 1)

    @pl.when(is_first)
    def _init():
        inter_acc[...] = jnp.zeros_like(inter_acc)
        isum_acc[...] = jnp.zeros_like(isum_acc)
        tsum_acc[...] = jnp.zeros_like(tsum_acc)

    x = x_ref[0].astype(jnp.float32)      # (C, TL) lane-dense slab
    lab = lab_ref[0]                      # (1, TL) int32 labels

    # One-hot via a single broadcasted compare against the class (sublane) index.
    cls = jax.lax.broadcasted_iota(jnp.int32, x.shape, 0)      # (C, TL)
    onehot = lab == cls                                        # (C, TL) bool
    # tsum == number of labels that fall in [0, num_classes) (one compare, no loop).
    valid = jnp.logical_and(lab >= 0, lab < num_classes).astype(jnp.float32)

    # Lane-parallel partial sums; scalars only materialize in the finalize step.
    inter_acc[...] += jnp.sum(jnp.where(onehot, x, 0.0), axis=0, keepdims=True)
    isum_acc[...] += jnp.sum(x, axis=0, keepdims=True)
    tsum_acc[...] += valid

    @pl.when(is_last)
    def _finalize():
        smooth = 1.0
        inter = jnp.sum(inter_acc[...])
        isum = jnp.sum(isum_acc[...])
        tsum = jnp.sum(tsum_acc[...])
        loss_ref[0] = 1.0 - (2.0 * inter + smooth) / (isum + tsum + smooth)


def dice_loss(x, labels, num_classes):
    """x: (N, C, H, W) float; labels: (N, 1, H, W) or (N, H, W) int. Returns scalar loss."""
    if labels.ndim == 4:
        labels = labels[:, 0]
    labels = labels.astype(jnp.int32)
    N, C, H, W = x.shape
    assert C == num_classes

    # Lane-dense flatten of the spatial dims (free reshape of contiguous dims).
    L = H * W
    x2 = x.reshape(N, C, L).astype(jnp.float32)
    lab2 = labels.reshape(N, 1, L)

    # Pick a lane tile: multiple of 128, capped both by bytes (~4 MiB per x block
    # so double-buffered blocks fit comfortably in scoped VMEM on v5e/v6e/v7x)
    # and by an absolute cap that keeps the VMEM accumulators small.
    tl_bytes_cap = (4 * 1024 * 1024) // (4 * max(C, 1))
    TL = max(128, (min(16384, tl_bytes_cap) // 128) * 128)
    TL = min(TL, _round_up(L, 128))
    L_pad = _round_up(L, TL)

    if L_pad != L:
        # Zero-pad input (adds 0 to all sums); pad labels with -1 (invalid -> one-hot
        # zero, validity count zero), so padding does not change the loss.
        x2 = jnp.pad(x2, ((0, 0), (0, 0), (0, L_pad - L)))
        lab2 = jnp.pad(lab2, ((0, 0), (0, 0), (0, L_pad - L)), constant_values=-1)

    num_tiles = L_pad // TL
    kernel = functools.partial(_dice_kernel, num_classes=num_classes)

    loss = pl.pallas_call(
        kernel,
        out_shape=jax.ShapeDtypeStruct((1,), jnp.float32),
        grid_spec=pltpu.PrefetchScalarGridSpec(
            num_scalar_prefetch=0,
            grid=(N, num_tiles),
            in_specs=[
                pl.BlockSpec((1, C, TL), lambda n, t: (n, 0, t)),
                pl.BlockSpec((1, 1, TL), lambda n, t: (n, 0, t)),
            ],
            out_specs=pl.BlockSpec(memory_space=pltpu.SMEM),
            scratch_shapes=[
                pltpu.VMEM((1, TL), jnp.float32),  # intersection partials
                pltpu.VMEM((1, TL), jnp.float32),  # sum(input) partials
                pltpu.VMEM((1, TL), jnp.float32),  # sum(one_hot) partials
            ],
        ),
        compiler_params=pltpu.CompilerParams(
            dimension_semantics=("arbitrary", "arbitrary"),
            vmem_limit_bytes=32 * 1024 * 1024,
        ),
        cost_estimate=pl.CostEstimate(
            flops=3 * N * C * L_pad,
            transcendentals=0,
            bytes_accessed=(N * C * L_pad + N * L_pad + 1) * 4,
        ),
    )(x2, lab2)
    return loss[0]


def _dice_loss_ref(x, labels, num_classes):
    if labels.ndim == 4:
        labels = labels[:, 0]
    one_hot = jax.nn.one_hot(labels, num_classes, dtype=jnp.float32)  # (N,H,W,C)
    one_hot = jnp.transpose(one_hot, (0, 3, 1, 2))                    # (N,C,H,W)
    smooth = 1.0
    iflat = x.astype(jnp.float32).reshape(-1)
    tflat = one_hot.reshape(-1)
    inter = jnp.sum(iflat * tflat)
    return 1.0 - (2.0 * inter + smooth) / (jnp.sum(iflat) + jnp.sum(tflat) + smooth)


if __name__ == "__main__":
    key = jax.random.PRNGKey(0)

    # Case 1: shapes from the spec-sized example (H*W already a multiple of 128).
    N, C, H, W = 2, 4, 16, 16
    k1, k2, k3, k4 = jax.random.split(key, 4)
    x = jax.random.uniform(k1, (N, C, H, W), dtype=jnp.float32)
    labels = jax.random.randint(k2, (N, 1, H, W), 0, C, dtype=jnp.int32)
    out = jax.block_until_ready(dice_loss(x, labels, C))
    ref = _dice_loss_ref(x, labels, C)
    assert jnp.allclose(out, ref, atol=1e-5, rtol=1e-5), (out, ref)

    # Case 2: non-128-multiple spatial size exercises the lane-padding path.
    N2, C2, H2, W2 = 2, 3, 10, 12
    x2 = jax.random.uniform(k3, (N2, C2, H2, W2), dtype=jnp.float32)
    labels2 = jax.random.randint(k4, (N2, 1, H2, W2), 0, C2, dtype=jnp.int32)
    out2 = jax.block_until_ready(dice_loss(x2, labels2, C2))
    ref2 = _dice_loss_ref(x2, labels2, C2)
    assert jnp.allclose(out2, ref2, atol=1e-5, rtol=1e-5), (out2, ref2)

    print("KERNEL_OK")
</pallas_src>

<mosaic_0001>
module attributes {stable_mosaic.version = 11 : i64} {
  func.func @_dice_kernel(%arg0: i32, %arg1: i32, %arg2: memref<1x4x256xf32, #tpu.memory_space<vmem>>, %arg3: memref<1x1x256xi32, #tpu.memory_space<vmem>>, %arg4: memref<1xf32, #tpu.memory_space<smem>>, %arg5: memref<1x256xf32, #tpu.memory_space<vmem>>, %arg6: memref<1x256xf32, #tpu.memory_space<vmem>>, %arg7: memref<1x256xf32, #tpu.memory_space<vmem>>) attributes {dimension_semantics = [#tpu.dimension_semantics<arbitrary>, #tpu.dimension_semantics<arbitrary>], iteration_bounds = array<i64: 2, 1>, scalar_prefetch = 0 : i64, scratch_operands = 3 : i64, tpu.core_type = #tpu.core_type<tc>, window_params = [{transform_indices = @transform_0, window_bounds = array<i64: 1, 4, 256>}, {transform_indices = @transform_1, window_bounds = array<i64: 1, 1, 256>}, {transform_indices = @transform_2, window_bounds = array<i64: 1>}]} {
    %c0_i32 = arith.constant 0 : i32
    %0 = arith.cmpi eq, %arg0, %c0_i32 : i32
    %c0_i32_0 = arith.constant 0 : i32
    %1 = arith.cmpi eq, %arg1, %c0_i32_0 : i32
    %2 = arith.andi %0, %1 : i1
    %c1_i32 = arith.constant 1 : i32
    %3 = arith.cmpi eq, %arg0, %c1_i32 : i32
    %c0_i32_1 = arith.constant 0 : i32
    %4 = arith.cmpi eq, %arg1, %c0_i32_1 : i32
    %5 = arith.andi %3, %4 : i1
    %6 = arith.extui %2 : i1 to i32
    %c0_i32_2 = arith.constant 0 : i32
    %7 = arith.cmpi ne, %6, %c0_i32_2 : i32
    scf.if %7 {
      %cst_24 = arith.constant 0.000000e+00 : f32
      %39 = vector.broadcast %cst_24 : f32 to vector<1x256xf32>
      %c0_25 = arith.constant 0 : index
      %c0_26 = arith.constant 0 : index
      %40 = vector.load %arg5[%c0_25, %c0_26] : memref<1x256xf32, #tpu.memory_space<vmem>>, vector<1x256xf32>
      tpu.vector_store %arg5[%c0_25, %c0_26], %39 {strides = array<i32>} : memref<1x256xf32, #tpu.memory_space<vmem>>, vector<1x256xf32>,
      %cst_27 = arith.constant 0.000000e+00 : f32
      %41 = vector.broadcast %cst_27 : f32 to vector<1x256xf32>
      %c0_28 = arith.constant 0 : index
      %c0_29 = arith.constant 0 : index
      %42 = vector.load %arg6[%c0_28, %c0_29] : memref<1x256xf32, #tpu.memory_space<vmem>>, vector<1x256xf32>
      tpu.vector_store %arg6[%c0_28, %c0_29], %41 {strides = array<i32>} : memref<1x256xf32, #tpu.memory_space<vmem>>, vector<1x256xf32>,
      %cst_30 = arith.constant 0.000000e+00 : f32
      %43 = vector.broadcast %cst_30 : f32 to vector<1x256xf32>
      %c0_31 = arith.constant 0 : index
      %c0_32 = arith.constant 0 : index
      %44 = vector.load %arg7[%c0_31, %c0_32] : memref<1x256xf32, #tpu.memory_space<vmem>>, vector<1x256xf32>
      tpu.vector_store %arg7[%c0_31, %c0_32], %43 {strides = array<i32>} : memref<1x256xf32, #tpu.memory_space<vmem>>, vector<1x256xf32>,
    } else {
    }
    %c0 = arith.constant 0 : index
    %c0_3 = arith.constant 0 : index
    %c0_4 = arith.constant 0 : index
    %8 = vector.load %arg2[%c0, %c0_3, %c0_4] : memref<1x4x256xf32, #tpu.memory_space<vmem>>, vector<1x4x256xf32>
    %9 = vector.shape_cast %8 : vector<1x4x256xf32> to vector<4x256xf32>
    %c0_5 = arith.constant 0 : index
    %c0_6 = arith.constant 0 : index
    %c0_7 = arith.constant 0 : index
    %10 = vector.load %arg3[%c0_5, %c0_6, %c0_7] : memref<1x1x256xi32, #tpu.memory_space<vmem>>, vector<1x1x256xi32>
    %11 = vector.shape_cast %10 : vector<1x1x256xi32> to vector<1x256xi32>
    %12 = tpu.iota {dimensions = array<i32: 0>} : vector<4x256xi32>
    %13 = vector.broadcast %11 : vector<1x256xi32> to vector<4x256xi32>
    %14 = arith.cmpi eq, %13, %12 : vector<4x256xi32>
    %c0_i32_8 = arith.constant 0 : i32
    %15 = vector.broadcast %c0_i32_8 : i32 to vector<1x256xi32>
    %16 = arith.cmpi sge, %11, %15 : vector<1x256xi32>
    %c4_i32 = arith.constant 4 : i32
    %17 = vector.broadcast %c4_i32 : i32 to vector<1x256xi32>
    %18 = arith.cmpi slt, %11, %17 : vector<1x256xi32>
    %19 = arith.andi %16, %18 : vector<1x256xi1>
    %20 = arith.extui %19 : vector<1x256xi1> to vector<1x256xi32>
    %21 = arith.sitofp %20 : vector<1x256xi32> to vector<1x256xf32>
    %c0_9 = arith.constant 0 : index
    %c0_10 = arith.constant 0 : index
    %22 = vector.load %arg5[%c0_9, %c0_10] : memref<1x256xf32, #tpu.memory_space<vmem>>, vector<1x256xf32>
    %cst = arith.constant 0.000000e+00 : f32
    %23 = vector.broadcast %cst : f32 to vector<4x256xf32>
    %24 = arith.select %14, %9, %23 : vector<4x256xi1>, vector<4x256xf32>
    %cst_11 = arith.constant dense<0.000000e+00> : vector<256xf32>
    %25 = vector.multi_reduction <add>, %24, %cst_11 [0] : vector<4x256xf32> to vector<256xf32>
    %26 = vector.shape_cast %25 : vector<256xf32> to vector<1x256xf32>
    %27 = arith.addf %22, %26 : vector<1x256xf32>
    %c0_12 = arith.constant 0 : index
    %c0_13 = arith.constant 0 : index
    %28 = vector.load %arg5[%c0_12, %c0_13] : memref<1x256xf32, #tpu.memory_space<vmem>>, vector<1x256xf32>
    tpu.vector_store %arg5[%c0_12, %c0_13], %27 {strides = array<i32>} : memref<1x256xf32, #tpu.memory_space<vmem>>, vector<1x256xf32>,
    %c0_14 = arith.constant 0 : index
    %c0_15 = arith.constant 0 : index
    %29 = vector.load %arg6[%c0_14, %c0_15] : memref<1x256xf32, #tpu.memory_space<vmem>>, vector<1x256xf32>
    %cst_16 = arith.constant dense<0.000000e+00> : vector<256xf32>
    %30 = vector.multi_reduction <add>, %9, %cst_16 [0] : vector<4x256xf32> to vector<256xf32>
    %31 = vector.shape_cast %30 : vector<256xf32> to vector<1x256xf32>
    %32 = arith.addf %29, %31 : vector<1x256xf32>
    %c0_17 = arith.constant 0 : index
    %c0_18 = arith.constant 0 : index
    %33 = vector.load %arg6[%c0_17, %c0_18] : memref<1x256xf32, #tpu.memory_space<vmem>>, vector<1x256xf32>
    tpu.vector_store %arg6[%c0_17, %c0_18], %32 {strides = array<i32>} : memref<1x256xf32, #tpu.memory_space<vmem>>, vector<1x256xf32>,
    %c0_19 = arith.constant 0 : index
    %c0_20 = arith.constant 0 : index
    %34 = vector.load %arg7[%c0_19, %c0_20] : memref<1x256xf32, #tpu.memory_space<vmem>>, vector<1x256xf32>
    %35 = arith.addf %34, %21 : vector<1x256xf32>
    %c0_21 = arith.constant 0 : index
    %c0_22 = arith.constant 0 : index
    %36 = vector.load %arg7[%c0_21, %c0_22] : memref<1x256xf32, #tpu.memory_space<vmem>>, vector<1x256xf32>
    tpu.vector_store %arg7[%c0_21, %c0_22], %35 {strides = array<i32>} : memref<1x256xf32, #tpu.memory_space<vmem>>, vector<1x256xf32>,
    %37 = arith.extui %5 : i1 to i32
    %c0_i32_23 = arith.constant 0 : i32
    %38 = arith.cmpi ne, %37, %c0_i32_23 : i32
    scf.if %38 {
      %c0_24 = arith.constant 0 : index
      %c0_25 = arith.constant 0 : index
      %39 = vector.load %arg5[%c0_24, %c0_25] : memref<1x256xf32, #tpu.memory_space<vmem>>, vector<1x256xf32>
      %40 = vector.shape_cast %39 : vector<1x256xf32> to vector<1x1x256xf32>
      %cst_26 = arith.constant dense<0.000000e+00> : vector<1xf32>
      %41 = vector.multi_reduction <add>, %40, %cst_26 [1, 2] : vector<1x1x256xf32> to vector<1xf32>
      %42 = vector.shape_cast %41 : vector<1xf32> to vector<1x1x1xf32>
      %43 = vector.extract %42[0, 0, 0] : f32 from vector<1x1x1xf32>
      %c0_27 = arith.constant 0 : index
      %c0_28 = arith.constant 0 : index
      %44 = vector.load %arg6[%c0_27, %c0_28] : memref<1x256xf32, #tpu.memory_space<vmem>>, vector<1x256xf32>
      %45 = vector.shape_cast %44 : vector<1x256xf32> to vector<1x1x256xf32>
      %cst_29 = arith.constant dense<0.000000e+00> : vector<1xf32>
      %46 = vector.multi_reduction <add>, %45, %cst_29 [1, 2] : vector<1x1x256xf32> to vector<1xf32>
      %47 = vector.shape_cast %46 : vector<1xf32> to vector<1x1x1xf32>
      %48 = vector.extract %47[0, 0, 0] : f32 from vector<1x1x1xf32>
      %c0_30 = arith.constant 0 : index
      %c0_31 = arith.constant 0 : index
      %49 = vector.load %arg7[%c0_30, %c0_31] : memref<1x256xf32, #tpu.memory_space<vmem>>, vector<1x256xf32>
      %50 = vector.shape_cast %49 : vector<1x256xf32> to vector<1x1x256xf32>
      %cst_32 = arith.constant dense<0.000000e+00> : vector<1xf32>
      %51 = vector.multi_reduction <add>, %50, %cst_32 [1, 2] : vector<1x1x256xf32> to vector<1xf32>
      %52 = vector.shape_cast %51 : vector<1xf32> to vector<1x1x1xf32>
      %53 = vector.extract %52[0, 0, 0] : f32 from vector<1x1x1xf32>
      %cst_33 = arith.constant 2.000000e+00 : f32
      %54 = arith.mulf %cst_33, %43 : f32
      %cst_34 = arith.constant 1.000000e+00 : f32
      %55 = arith.addf %54, %cst_34 : f32
      %56 = arith.addf %48, %53 : f32
      %cst_35 = arith.constant 1.000000e+00 : f32
      %57 = arith.addf %56, %cst_35 : f32
      %58 = arith.divf %55, %57 : f32
      %cst_36 = arith.constant 1.000000e+00 : f32
      %59 = arith.subf %cst_36, %58 : f32
      %c0_37 = arith.constant 0 : index
      %60 = memref.load %arg4[%c0_37] : memref<1xf32, #tpu.memory_space<smem>>
      memref.store %59, %arg4[%c0_37] : memref<1xf32, #tpu.memory_space<smem>>
    } else {
    }
    return
  }
  func.func @transform_0(%arg0: i32, %arg1: i32) -> (i32, i32, i32) {
    %c0_i32 = arith.constant 0 : i32
    %c0_i32_0 = arith.constant 0 : i32
    return %arg0, %c0_i32, %arg1 : i32, i32, i32
  }
  func.func @transform_1(%arg0: i32, %arg1: i32) -> (i32, i32, i32) {
    %c0_i32 = arith.constant 0 : i32
    %c0_i32_0 = arith.constant 0 : i32
    return %arg0, %c0_i32, %arg1 : i32, i32, i32
  }
  func.func @transform_2(%arg0: i32, %arg1: i32) -> i32 {
    %c0_i32 = arith.constant 0 : i32
    %c0_i32_0 = arith.constant 0 : i32
    return %c0_i32 : i32
  }
}

</mosaic_0001>

<bundles_post_ra>
// kernel: tpu_custom_call.1
= control target key start
LH: loop header
LB: loop body
LE: loop exit
PB: predicated region body
PF: predicated region fallthrough
CT: control target
= control target key end

     0   :  { %7 = vsyncpa [#allocation6], 0  ;;  %s976_s0 = inlined_call_operand.hbm [shape: f32[2,4,256], index: 0, kind: input, shape index: {}]   ;;  %s977_s1 = inlined_call_operand.hbm [shape: s32[2,1,256], index: 1, kind: input, shape index: {}]   ;;  %s978_s2 = inlined_call_operand.hbm [shape: f32[1], index: 2, kind: output, shape index: {}]  }
   0x1   :  { %9 = vsyncpa [#allocation6 + $0x1], 0 }
   0x2   :  { %10 = vsyncpa [#allocation9], 0 }
   0x3   :  { %12 = vsyncpa [#allocation9 + $0x1], 0 }
   0x4   :  { %13 = vsyncpa [#allocation7], 0  ;;  %s763_s9 = smov 0   ;;  %s765_s10 = smov 0  }
   0x5   :  { %s767_s11 = smov 0   ;;  %s769_s12 = smov 0  }
   0x6   :  { %s771_s13 = smov 0   ;;  %s773_s14 = smov 0  }
   0x7 LB: > { %s506_s15 = sadd.s32 4294967295, %s740_s14   ;;  %s31_s16 = sadd.s32 1, %s736_s13  ;;  %s740_s14 = sphi %s773_s14, %s19_s14   ;;  %s736_s13 = sphi %s771_s13, %s994_s13   ;;  %s732_s12 = sphi %s769_s12, %s993_s12   ;;  %s728_s11 = sphi %s767_s11, %s992_s11   ;;  %s724_s10 = sphi %s765_s10, %s991_s10   ;;  %s720_s9 = sphi %s763_s9, %s990_s9  }
   0x8   : > { %p33_p0 = scmp.ge.s32.totalorder %s31_s16, 2  ;;  %s40_s17 = sadd.s32 1, %s728_s11 }
   0x9   : > { %p47_p1 = scmp.ne.s32.totalorder %s728_s11, %s724_s10  ;;  %p48_p2 = scmp.eq.s32.totalorder %s740_s14, 0 }
   0xa   : > { %s996_s16 = smov (%p33_p0, %s31_s16), 0  ;;  %p53_p4 = scmp.ne.s32.totalorder %s724_s10, %s720_s9 }
   0xb   : > { %p799_p3 = por %p48_p2, %p47_p1  ;;  %s35_s19 = ssub.s32 %s736_s13, %s996_s16 }
   0xc   : > { %p54_p5 = scmp.eq.s32.totalorder %s506_s15, 0  ;;  %p38_p6 = scmp.eq.s32.totalorder %s35_s19, 0 }
   0xd   : > { %p552_p8 = scmp.lt.s32.totalorder %s740_s14, 2  ;;  %s817_s22 = sand.u32 1, %s728_s11  }
   0xe   : > { %p808_p7 = por %p54_p5, %p53_p4  ;;  %s525_s23 = sshll.u32 %s736_s13, 7 }
   0xf   : > { %s814_s21 = scalar_select %p38_p6, %s728_s11, %s40_s17  }
  0x10   : > { %s981_s20 = scalar_select %p808_p7, 1, 0 }
  0x11   : > { %s509_s24 = sshll.u32 %s817_s22, 3  ;;  %s824_s27 = scalar_lea.hbm %s976_s0, %s525_s23 }
  0x12   : > { %s130_s28 = scalar_lea.vmem [#allocation5], %s509_s24  ;;  %p828_p9 = pnand %p552_p8, %p799_p3 }
  0x13   : > { %s140_s29 = sshll.u32 %s130_s28, 4  ;;  %s127_s3 = scalar_lea.sflag [#allocation6], %s817_s22  ;;  %s832_s29 = int_to_ptr.vmem [resolvable:$true] %s140_s29 }
  0x14   : > { %s610_s4 = scalar_lea.hbm %s824_s27, 128  ;;  %p612_p13 = pneg %p828_p9 }
  0x15   : > { %p611_p12 = scmp.ne.s32.totalorder %s824_s27, %s610_s4  ;;  %s615_s7 = scalar_lea.hbm %s976_s0, 256 }
  0x16   : > { %p616_p2 = scmp.lt.u32.totalorder %s824_s27, %s976_s0  ;;  %p617_p3 = scmp.lt.u32.totalorder %s615_s7, %s610_s4 }
  0x17   : > { %p613_p0 = pnand %p612_p13, %p611_p12  ;;  %p619_p5 = scmp.lt.u32.totalorder %s610_s4, %s824_s27 }
  0x18   : > { %p618_p4 = por %p617_p3, %p616_p2 }
  0x19   : > { %p614_p1 = pneg %p613_p0 }
  0x1a   : > { %p620_p6 = por %p619_p5, %p618_p4 }
  0x1c   : > { %p621_p8 = pnand %p620_p6, %p614_p1 }
  0x1e   : > { %624 = shalt.err (!%p621_p8)
}
  0x1f   : > { %s625_s17 = scalar_lea.vmem %s832_s29, 128  ;;  %s742_s18 = smov [#allocation5]  }
  0x20   : > { %p626_p12 = scmp.ne.s32.totalorder %s832_s29, %s625_s17  ;;  %s630_s19 = sshll.u32 %s742_s18, 4  ;;  %s631_s19 = int_to_ptr.vmem [resolvable:$false] %s630_s19 }
  0x21   : > { %s632_s23 = scalar_lea.vmem %s631_s19, 256  ;;  %p633_p11 = scmp.lt.s32.totalorder %s832_s29, %s631_s19 }
  0x22   : > { %p628_p0 = pnand %p626_p12, %p612_p13  ;;  %p634_p2 = scmp.lt.s32.totalorder %s632_s23, %s625_s17 }
  0x24   : > { %p629_p10 = pneg %p628_p0  ;;  %p635_p3 = por %p634_p2, %p633_p11 }
  0x26   : > { %p636_p4 = pnand %p635_p3, %p629_p10 }
  0x28   : > { %639 = shalt.err (!%p636_p4)
}
  0x29   : > { %548 = dma.hbm_to_vmem [thread:$0]  (!%p828_p9), %s824_s27, 128, %s832_s29, %s127_s3  }
  0x2a   : > { %p983_p1 = scmp.lt.s32.totalorder %s740_s14, 3  ;;  %p984_p5 = scmp.ge.s32.totalorder %s740_s14, 1 }
  0x2b   : > { %s512_s25 = sshll.u32 %s817_s22, 1  ;;  %s526_s26 = sshll.u32 %s736_s13, 5 }
  0x2c   : > { %p866_p6 = pnand %p984_p5, %p983_p1  ;;  %s875_s5 = scalar_lea.hbm %s977_s1, %s526_s26 }
  0x2d   : > { %s151_s6 = scalar_lea.vmem [#allocation8], %s512_s25  ;;  %s148_s27 = scalar_lea.sflag [#allocation9], %s817_s22 }
  0x2e   : > { %s985_s24 = scalar_select %p866_p6, 1, 0 }
  0x2f   : > { %s161_s7 = sshll.u32 %s151_s6, 4  ;;  %s640_s29 = scalar_lea.hbm %s875_s5, 32  ;;  %s162_s7 = int_to_ptr.vmem [resolvable:$true] %s161_s7 }
  0x30   : > { %p641_p10 = scmp.ne.s32.totalorder %s875_s5, %s640_s29  ;;  %s645_s9 = scalar_lea.hbm %s977_s1, 64 }
  0x31   : > { %p646_p12 = scmp.lt.u32.totalorder %s875_s5, %s977_s1  ;;  %p647_p0 = scmp.lt.u32.totalorder %s645_s9, %s640_s29 }
  0x32   : > { %p643_p11 = pnand %p641_p10, %p612_p13  ;;  %p649_p3 = scmp.lt.u32.totalorder %s640_s29, %s875_s5 }
  0x33   : > { %p648_p2 = por %p647_p0, %p646_p12 }
  0x34   : > { %p644_p8 = pneg %p643_p11 }
  0x35   : > { %p650_p4 = por %p649_p3, %p648_p2 }
  0x37   : > { %p651_p1 = pnand %p650_p4, %p644_p8 }
  0x39   : > { %654 = shalt.err (!%p651_p1)
}
  0x3a   : > { %s655_s22 = scalar_lea.vmem %s162_s7, 32  ;;  %s743_s19 = smov [#allocation8]  }
  0x3b   : > { %p656_p5 = scmp.ne.s32.totalorder %s162_s7, %s655_s22  ;;  %s660_s23 = sshll.u32 %s743_s19, 4  ;;  %s661_s23 = int_to_ptr.vmem [resolvable:$false] %s660_s23 }
  0x3c   : > { %s662_s25 = scalar_lea.vmem %s661_s23, 64  ;;  %p663_p7 = scmp.lt.s32.totalorder %s162_s7, %s661_s23 }
  0x3d   : > { %p658_p10 = pnand %p656_p5, %p612_p13  ;;  %p664_p6 = scmp.lt.s32.totalorder %s662_s25, %s655_s22 }
  0x3f   : > { %p659_p11 = pneg %p658_p10  ;;  %p665_p0 = por %p664_p6, %p663_p7 }
  0x41   : > { %p666_p12 = pnand %p665_p0, %p659_p11 }
  0x43   : > { %669 = shalt.err (!%p666_p12)
}
  0x44   : > { %551 = dma.hbm_to_vmem [thread:$0]  (!%p828_p9), %s875_s5, 32, %s162_s7, %s148_s27  }
  0x45   : > { %p986_p8 = scmp.ne.s32.totalorder %s985_s24, 0 }
  0x46   : > { %s172_s26 = sand.u32 (!%p986_p8), 1, %s724_s10   ;;  %p987_p13 = scmp.ne.s32.totalorder (!%p986_p8), %s981_s20, 0 }
  0x47   : > { %170 = sbr.rel (%p986_p8) target bundleno = 430 (0x1ae), region = 28  ;;  %s516_s28 = sshll.u32 (!%p986_p8), %s172_s26, 3 }
  0x48   : > { %s173_s4 = scalar_lea.sflag (!%p986_p8), [#allocation6], %s172_s26  ;;  %s176_s6 = scalar_lea.vmem (!%p986_p8), [#allocation5], %s516_s28 }
  0x4e   : > { %707 = dma.done.wait (%p987_p13), %s173_s4, 128  }
  0x4f   : > { %709 = vsyncadd (%p987_p13), %s173_s4, 4294967168  ;;  %s517_s29 = sshll.u32 %s172_s26, 1  ;;  %s182_s3 = scalar_lea.sflag [#allocation9], %s172_s26 }
  0x50   : > { %s185_s30 = scalar_lea.vmem [#allocation8], %s517_s29 }
  0x51   : > { %711 = dma.done.wait (%p987_p13), %s182_s3, 32  }
  0x52   : > { %713 = vsyncadd (%p987_p13), %s182_s3, 4294967264  ;;  %p208_p7 = scmp.eq.s32.totalorder %s732_s12, 0  ;;  %p212_p9 = scmp.eq.s32.totalorder %s732_s12, 1 }
  0x53   : > { %v217_v0 = vlaneseq (%p208_p7)  ;;  %v744_v1 = vmov (%p208_p7), 0.0  }
  0x54   : > { %216 = sbr.rel (!%p208_p7) target bundleno = 91 (0x5b), region = 40 }
  0x55   : > { %vm219_vm0 = vcmp.lt.s32.totalorder (%p208_p7), %v217_v0, 256 }
  0x56   : > { %221 = vst.msk [vmem:[#allocation2] sm:$0x3] (%p208_p7), %vm219_vm0, %v744_v1  ;;  %222 = vst.msk [vmem:[#allocation3] sm:$0x3] (%p208_p7), %vm219_vm0, %v744_v1 }
  0x57   : > { %223 = vst.msk [vmem:[#allocation4] sm:$0x3] (%p208_p7), %vm219_vm0, %v744_v1 }
  0x5b PF: > { %v224_v2 = vld [vmem:[%s176_s6] sm:$0xff]  ;;  %v225_v3 = vld [vmem:[%s185_s30] sm:$0x3]  ;;  %v226_v4 = vlaneseq  ;;  %vm249_vm1 = vcmask 1043456   ;;  %v745_v15 = vmov 0.0   ;;  %vm340_vm8 = vcmask (%p212_p9), 1040384  }
  0x5c   : > { %v245_v5 = vcombine.high %v224_v2, %v224_v2  ;;  %v289_v6 = vsel %vm249_vm1, %v224_v2, 0.0  ;;  %vm238_vm2 = vcmp.ge.s32.totalorder %v225_v3, 0  ;;  %vm239_vm3 = vcmp.lt.s32.totalorder %v225_v3, 4 }
  0x5d   : > { %v227_v7 = vshrl.u32 %v226_v4, 7  ;;  %v290_v8 = vrot.slane %v289_v6, 4  ;;  %vm240_vm4 = vmand %vm238_vm2, %vm239_vm3  ;;  %vm918_vm5 = vcmp.lt.s32.totalorder %v226_v4, 256  ;;  %v746_v21 = vmov 1966171168  }
  0x5e   : > { %v296_v9 = vsel %vm249_vm1, %v245_v5, 0.0  ;;  %v323_v13 = vld [vmem:[#allocation4] sm:$0x3]  ;;  %v520_v16 = vsel %vm240_vm4, 1.0, %v745_v15  ;;  %v268_v22 = vunpack.c.l.s4 %v746_v21  ;;  %v288_v50 = vld [vmem:[#allocation3] sm:$0x3] }
  0x5f   : > { %v912_v10 = vsub.s32 0, %v227_v7  ;;  %v914_v11 = vsub.s32 1, %v227_v7  ;;  %v291_v12 = vadd.f32 %v290_v8, %v289_v6  ;;  %v297_v14 = vrot.slane %v296_v9, 4  ;;  %v243_v57 = vld [vmem:[#allocation2] sm:$0x3] }
  0x60   : > { %v324_v24 = vadd.f32 %v520_v16, %v323_v13  ;;  %v269_v34 = vunpack.c.0.s8 %v268_v22 }
  0x61   : > { %v231_v17 = vrot.slane %v225_v3, %v912_v10  ;;  %v235_v18 = vrot.slane %v225_v3, %v914_v11  ;;  %v292_v20 = vrot.slane %v291_v12, 2  ;;  %v298_v23 = vadd.f32 %v297_v14, %v296_v9 }
  0x62   : > { %325 = vst.msk [vmem:[#allocation4] sm:$0x3] %vm918_vm5, %v324_v24  ;;  %v272_v42 = vsub.s32 %v269_v34, %v227_v7 }
  0x63   : > { %vm236_vm6 = vcmp.eq.s32.totalorder %v231_v17, %v227_v7  ;;  %vm237_vm7 = vcmp.eq.s32.totalorder %v235_v18, %v227_v7  ;;  %v293_v25 = vadd.f32 %v292_v20, %v291_v12  ;;  %v299_v28 = vrot.slane %v298_v23, 2 }
  0x64   : > { %v247_v26 = vsel %vm236_vm6, %v224_v2, 0.0  ;;  %v248_v27 = vsel %vm237_vm7, %v245_v5, 0.0 }
  0x65   : > { %v250_v29 = vsel %vm249_vm1, %v247_v26, 0.0  ;;  %v257_v30 = vsel %vm249_vm1, %v248_v27, 0.0  ;;  %v294_v31 = vrot.slane %v293_v25, 1  ;;  %v300_v35 = vadd.f32 %v299_v28, %v298_v23 }
  0x66   : > { %v251_v32 = vrot.slane %v250_v29, 4  ;;  %v258_v33 = vrot.slane %v257_v30, 4 }
  0x67   : > { %v295_v38 = vadd.f32 %v294_v31, %v293_v25  ;;  %v301_v39 = vrot.slane %v300_v35, 1 }
  0x68   : > { %v252_v36 = vadd.f32 %v251_v32, %v250_v29  ;;  %v259_v37 = vadd.f32 %v258_v33, %v257_v30 }
  0x69   : > { %v302_v43 = vadd.f32 %v301_v39, %v300_v35  ;;  %v377_v60 = vld [vmem:[#allocation4] sm:$0x3] (%p212_p9) }
  0x6a   : > { %v253_v40 = vrot.slane %v252_v36, 2  ;;  %v260_v41 = vrot.slane %v259_v37, 2  ;;  %v382_v62 = vrot.slane (%p212_p9), %v377_v60, %v912_v10  ;;  %v386_v63 = vrot.slane (%p212_p9), %v377_v60, %v914_v11 }
  0x6b   : > { %v305_v46 = vcombine.low %v295_v38, %v302_v43 }
  0x6c   : > { %v254_v44 = vadd.f32 %v253_v40, %v252_v36  ;;  %v261_v45 = vadd.f32 %v260_v41, %v259_v37  ;;  %v389_v5 = vsel (%p212_p9), %vm340_vm8, %v382_v62, 0.0  ;;  %v390_v6 = vsel (%p212_p9), %vm340_vm8, %v386_v63, 0.0 }
  0x6d   : > { %v312_v49 = vrot.slane %v305_v46, %v272_v42  ;;  %v391_v9 = vadd.f32 (%p212_p9), %v390_v6, %v389_v5 }
  0x6e   : > { %v255_v47 = vrot.slane %v254_v44, 1  ;;  %v262_v48 = vrot.slane %v261_v45, 1 }
  0x6f   : > { %v319_v53 = vrot.slane %v312_v49, %v272_v42  ;;  %392 = vadd.xlane.f32.xlu1 (%p212_p9), %v391_v9 }
  0x70   : > { %v256_v51 = vadd.f32 %v255_v47, %v254_v44  ;;  %v263_v52 = vadd.f32 %v262_v48, %v261_v45 }
  0x71   : > { %v321_v55 = vadd.f32 %v319_v53, %v288_v50 }
  0x72   : > { %v266_v54 = vcombine.low %v256_v51, %v263_v52 }
  0x73   : > { %322 = vst.msk [vmem:[#allocation3] sm:$0x3] %vm918_vm5, %v321_v55 }
  0x74   : > { %v273_v56 = vrot.slane %v266_v54, %v272_v42  ;;  %327 = sbr.rel (!%p212_p9) target bundleno = 415 (0x19f), region = 44 }
  0x76   : > { %v280_v58 = vrot.slane %v273_v56, %v272_v42 }
  0x78   : > { %v282_v59 = vadd.f32 %v280_v58, %v243_v57 }
  0x7a   : > { %287 = vst.msk [vmem:[#allocation2] sm:$0x3] %vm918_vm5, %v282_v59  ;;  %v353_v2 = vld [vmem:[#allocation3] sm:$0x3] (%p212_p9) }
  0x7b   : > { %v358_v3 = vrot.slane %v353_v2, %v912_v10  ;;  %v362_v4 = vrot.slane %v353_v2, %v914_v11 }
  0x7d   : > { %v365_v13 = vsel %vm340_vm8, %v358_v3, 0.0  ;;  %v366_v14 = vsel %vm340_vm8, %v362_v4, 0.0 }
  0x7e   : > { %v367_v15 = vadd.f32 %v366_v14, %v365_v13 }
  0x81   : > { %v328_v61 = vld [vmem:[#allocation2] sm:$0x3] }
  0x82   : > { %v333_v0 = vrot.slane %v328_v61, %v912_v10  ;;  %v337_v1 = vrot.slane %v328_v61, %v914_v11 }
  0x84   : > { %v341_v7 = vsel %vm340_vm8, %v333_v0, 0.0  ;;  %v342_v8 = vsel %vm340_vm8, %v337_v1, 0.0 }
  0x85   : > { %v343_v12 = vadd.f32 %v342_v8, %v341_v7 }
  0x87   : > { %344 = vadd.xlane.f32.xlu0 %v343_v12 }
  0x8b   : > { %368 = vadd.xlane.f32.xlu0 %v367_v15 }
  0xfc   : > { %v393_v10 = vpop.xlane.xlu1 %392 }
  0xfd   : > { %v394_v16 = vrot.slane %v393_v10, 4 }
  0xff   : > { %v395_v18 = vadd.f32 %v394_v16, %v393_v10 }
 0x101   : > { %v396_v21 = vrot.slane %v395_v18, 2 }
 0x103   : > { %v397_v26 = vadd.f32 %v396_v21, %v395_v18 }
 0x105   : > { %v398_v31 = vrot.slane %v397_v26, 1 }
 0x107   : > { %v399_v34 = vadd.f32 %v398_v31, %v397_v26 }
 0x114   : > { %v345_v11 = vpop.xlane.xlu0 %344 }
 0x115   : > { %v346_v17 = vrot.slane %v345_v11, 4 }
 0x117   : > { %v347_v19 = vadd.f32 %v346_v17, %v345_v11 }
 0x118   : > { %v369_v20 = vpop.xlane.xlu0 %368 }
 0x119   : > { %v348_v22 = vrot.slane %v347_v19, 2  ;;  %v370_v23 = vrot.slane %v369_v20, 4 }
 0x11b   : > { %v371_v24 = vadd.f32 %v370_v23, %v369_v20  ;;  %v349_v25 = vadd.f32 %v348_v22, %v347_v19 }
 0x11d   : > { %v372_v27 = vrot.slane %v371_v24, 2  ;;  %v350_v28 = vrot.slane %v349_v25, 1 }
 0x11f   : > { %v373_v29 = vadd.f32 %v372_v27, %v371_v24  ;;  %v351_v30 = vadd.f32 %v350_v28, %v349_v25 }
 0x121   : > { %529 = vpush %v351_v30  ;;  %v374_v32 = vrot.slane %v373_v29, 1 }
 0x123   : > { %v375_v33 = vadd.f32 %v374_v32, %v373_v29 }
 0x125   : > { %531 = vpush %v375_v33 }
 0x126   : > { %533 = vpush %v399_v34 }
 0x152   : > { %s530_s12 = spop %529 }
 0x153   : > { %s401_s27 = smul.f32 2.0, %s530_s12 }
 0x155   : > { %s402_s8 = sadd.f32 1.0, %s401_s27 }
 0x156   : > { %s532_s20 = spop %531 }
 0x157   : > { %s534_s24 = spop %533 }
 0x158   : > { %s403_s5 = sadd.f32 %s534_s24, %s532_s20 }
 0x15a   : > { %s404_s7 = sadd.f32 1.0, %s403_s5 }
 0x15c   : > { %v405_v35 = vstv %s404_s7 }
 0x15d   : > { %608 = vrcp.f32 %v405_v35 }
 0x167   : > { %v609_v36 = vpop.eup %608 }
 0x168   : > { %535 = vpush %v609_v36 }
 0x199   : > { %s536_s9 = spop %535 }
 0x19a   : > { %s408_s17 = smul.f32 %s536_s9, %s402_s8 }
 0x19c   : > { %s409_s18 = ssub.f32 1.0, %s408_s17 }
 0x19e   : > { %411 = sst [smem:[#allocation10]] %s409_s18 }
 0x19f PF: > { %p553_p6 = scmp.eq.s32.totalorder %s506_s15, 1  ;;  %s670_s23 = scalar_lea.hbm %s978_s2, 16 }
 0x1a0   : > { %p671_p2 = scmp.ne.s32.totalorder %s978_s2, %s670_s23  ;;  %p676_p1 = scmp.lt.u32.totalorder %s670_s23, %s978_s2 }
 0x1a2   : > { %p672_p3 = pnand %p671_p2, %p553_p6 }
 0x1a4   : > { %p673_p4 = pneg %p672_p3 }
 0x1a6   : > { %p678_p5 = pnand %p676_p1, %p673_p4 }
 0x1a8   : > { %681 = shalt.err (!%p678_p5)
}
 0x1a9   : > { %s747_s6 = smov [#allocation10]  }
 0x1aa   : > { %542 = dma.smem_to_hbm (%p553_p6), %s747_s6, 16, %s978_s2, [#allocation7]  }
 0x1ab   : > { %715 = dma.done.wait (%p553_p6), [#allocation7], 16  }
 0x1ac   : > { %717 = vsyncadd (%p553_p6), [#allocation7], 4294967280 }
 0x1ad   : > { %425 = sfence }
 0x1ae PF: > { %s19_s14 = sadd.s32 1, %s740_s14   ;;  %s990_s9 = smov %s724_s10 }
 0x1af   : > { %p16_p10 = scmp.ge.s32.totalorder %s19_s14, 4   ;;  %s991_s10 = smov %s728_s11 }
 0x1b0   : > { %s992_s11 = smov %s814_s21  ;;  %s993_s12 = smov %s736_s13 }
 0x1b1   : > { %s994_s13 = smov %s996_s16  ;;  %18 = sbr.rel (!%p16_p10) target bundleno = 7 (0x7), region = 87 }
 0x1b8   :  { %431 = vsyncpa [#allocation6], 1 }
 0x1b9   :  { %433 = vsyncpa [#allocation6 + $0x1], 1 }
 0x1ba   :  { %434 = vsyncpa [#allocation9], 1 }
 0x1bb   :  { %436 = vsyncpa [#allocation9 + $0x1], 1 }
 0x1bc   :  { %437 = vsyncpa [#allocation7], 1 }
 0x1bd   :  { %439 = vsyncpa [#allocation7 + $0x1], 1 }

</bundles_post_ra>
